<compile_context>
chip_gen: v6e
topology: v6e:2x2x1
jax: 0.10.0
libtpu: 0.0.40
codegen_flags: <defaults>
</compile_context>

<pallas_src>
import functools

import numpy as np
import jax
import jax.numpy as jnp
from jax.experimental import pallas as pl
from jax.experimental.pallas import tpu as pltpu


def _round_up(x, m):
    return (x + m - 1) // m * m


def _pick_tm(rows, dp, np_, in_bytes, out_bytes, w_bytes_per):
    """Largest row tile whose double-buffered in/out tiles plus the resident
    (non-rotating) weight fit a conservative VMEM budget, capped so tiny
    problems are not padded up to a huge tile."""
    budget = 24 * 1024 * 1024
    w_bytes = dp * np_ * w_bytes_per
    cap = min(1024, _round_up(rows, 8))
    tm = 8
    for cand in (8, 16, 32, 64, 128, 256, 512, 1024):
        if cand > cap:
            break
        tile_bytes = 2 * cand * (dp * in_bytes + np_ * out_bytes)
        if tile_bytes + w_bytes <= budget:
            tm = cand
    return tm


def spt_kernel(x_ref, w_ref, b_ref, o_ref, *, inv_d, compute_dtype):
    """Fused LayerNorm (affine pre-folded into W / b) + Linear on one row tile.

    x_ref: (TM, Dp)  zero-padded patch features (io dtype)
    w_ref: (Dp, Np)  gamma-folded, row-permuted, zero-padded weight (compute dtype)
    b_ref: (1,  Np)  beta-folded, zero-padded bias, f32
    o_ref: (TM, Np)  f32 output tile (lane-dense)
    """
    x = x_ref[...].astype(jnp.float32)
    # LayerNorm statistics over the *true* feature width: zero padding keeps the
    # sums exact, and E[x^2] - mean^2 avoids the padded columns of (x - mean).
    mean = jnp.sum(x, axis=-1, keepdims=True) * inv_d
    var = jnp.sum(x * x, axis=-1, keepdims=True) * inv_d - mean * mean
    xn = (x - mean) * jax.lax.rsqrt(var + 1e-5)
    # Padded columns of xn are nonzero but multiply zero rows of W -> no effect.
    out = jnp.dot(xn.astype(compute_dtype), w_ref[...],
                  preferred_element_type=jnp.float32)
    o_ref[...] = (out + b_ref[...]).astype(o_ref.dtype)


def spt_forward(x_set, gamma, beta, weight, bias, *, patch_size,
                compute_dtype=jnp.float32, io_dtype=None):
    """x_set: (bs, ns, ch, W, H). Returns (bs, num_patches, dim) float32."""
    bs, ns, ch, W, H = x_set.shape
    p = patch_size
    nh, nw = W // p, H // p
    patch_dim = p * p * ns * ch
    dim = weight.shape[1]
    if io_dtype is None:
        io_dtype = jnp.float32

    # ---- glue: patch extraction keeping the natural (ns, ch, p1, p2) feature
    # ordering; the minor image axis (p2) stays minor -> cheap rearrange.
    x = x_set.astype(io_dtype).reshape(bs, ns, ch, nh, p, nw, p)
    x = jnp.transpose(x, (0, 3, 5, 1, 2, 4, 6))          # (b, nh, nw, ns, ch, p1, p2)
    flat = x.reshape(bs * nh * nw, patch_dim)

    # ---- fold LayerNorm affine into the Linear at trace time.
    g = gamma.reshape(-1).astype(jnp.float32)
    b = beta.reshape(-1).astype(jnp.float32)
    w = weight.astype(jnp.float32)
    w_fold = g[:, None] * w                               # (patch_dim, dim)
    b_fold = b @ w + bias.reshape(-1).astype(jnp.float32)  # (dim,)

    # ---- statically permute weight rows from the reference (p1 p2 c) feature
    # ordering (c = ch_i*ns + ns_i after the module's permute+view) to our
    # (ns, ch, p1, p2) ordering.
    ns_i, ch_i, p1, p2 = np.meshgrid(np.arange(ns), np.arange(ch),
                                     np.arange(p), np.arange(p), indexing="ij")
    ref_idx = ((p1 * p + p2) * (ch * ns) + ch_i * ns + ns_i).reshape(-1)
    w_fold = w_fold[ref_idx, :]

    # ---- pad to lane/sublane friendly sizes.
    rows = bs * nh * nw
    Dp = _round_up(patch_dim, 128)
    Np = _round_up(dim, 128)
    in_bytes = jnp.dtype(io_dtype).itemsize
    w_bytes = jnp.dtype(compute_dtype).itemsize
    TM = _pick_tm(rows, Dp, Np, in_bytes, 4, w_bytes)
    rows_pad = _round_up(rows, TM)

    flat_p = jnp.pad(flat, ((0, rows_pad - rows), (0, Dp - patch_dim)))
    w_p = jnp.pad(w_fold, ((0, Dp - patch_dim), (0, Np - dim))).astype(compute_dtype)
    b_p = jnp.pad(b_fold[None, :], ((0, 0), (0, Np - dim)))

    kernel = functools.partial(spt_kernel, inv_d=1.0 / patch_dim,
                               compute_dtype=compute_dtype)
    out_flat = pl.pallas_call(
        kernel,
        out_shape=jax.ShapeDtypeStruct((rows_pad, Np), jnp.float32),
        grid_spec=pltpu.PrefetchScalarGridSpec(
            num_scalar_prefetch=0,
            grid=(rows_pad // TM,),
            in_specs=[
                pl.BlockSpec((TM, Dp), lambda i: (i, 0)),
                pl.BlockSpec((Dp, Np), lambda i: (0, 0)),
                pl.BlockSpec((1, Np), lambda i: (0, 0)),
            ],
            out_specs=pl.BlockSpec((TM, Np), lambda i: (i, 0)),
        ),
        compiler_params=pltpu.CompilerParams(
            dimension_semantics=("parallel",),
            vmem_limit_bytes=64 * 1024 * 1024,
        ),
    )(flat_p, w_p, b_p)

    return out_flat[:rows, :dim].reshape(bs, nh * nw, dim)


def reference(x_set, gamma, beta, weight, bias, *, patch_size):
    """Faithful (un-optimized) reproduction of the PyTorch forward."""
    bs, ns, ch, W, H = x_set.shape
    p = patch_size
    C = ch * ns
    x = jnp.transpose(x_set, (0, 2, 1, 3, 4)).reshape(bs, C, W, H)
    nh, nw = W // p, H // p
    x = x.reshape(bs, C, nh, p, nw, p)
    x = jnp.transpose(x, (0, 2, 4, 3, 5, 1)).reshape(bs, nh * nw, p * p * C)
    mean = jnp.mean(x, axis=-1, keepdims=True)
    var = jnp.mean((x - mean) ** 2, axis=-1, keepdims=True)
    y = (x - mean) / jnp.sqrt(var + 1e-5) * gamma.reshape(-1) + beta.reshape(-1)
    return y @ weight + bias.reshape(-1)


if __name__ == "__main__":
    # Small shapes consistent with the module defaults (sample_size=5, channels=3).
    bs, ns, ch = 2, 5, 3
    W = H = 16
    patch_size = 4
    dim = 32
    patch_dim = patch_size * patch_size * ns * ch   # 240

    key = jax.random.PRNGKey(0)
    kx, kw, kb, kg, kbe = jax.random.split(key, 5)

    x_set = jax.random.normal(kx, (bs, ns, ch, W, H), dtype=jnp.float32)
    gamma = 1.0 + 0.1 * jax.random.normal(kg, (patch_dim,), dtype=jnp.float32)
    beta = 0.1 * jax.random.normal(kbe, (patch_dim,), dtype=jnp.float32)
    weight = jax.random.normal(kw, (patch_dim, dim), dtype=jnp.float32) / jnp.sqrt(
        jnp.float32(patch_dim))
    bias = 0.01 * jax.random.normal(kb, (dim,), dtype=jnp.float32)

    ref = reference(x_set, gamma, beta, weight, bias, patch_size=patch_size)

    # f32 I/O + f32 MXU path (tight check).
    out = spt_forward(x_set, gamma, beta, weight, bias, patch_size=patch_size)
    out = jax.block_until_ready(out)
    assert out.shape == (bs, (W // patch_size) * (H // patch_size), dim)
    assert jnp.allclose(out, ref, atol=1e-4, rtol=1e-4), float(
        jnp.max(jnp.abs(out - ref)))

    # bf16 I/O + bf16 MXU path (recommended on v6e / v7x) — loose tolerance.
    out_bf16 = spt_forward(x_set, gamma, beta, weight, bias,
                           patch_size=patch_size,
                           compute_dtype=jnp.bfloat16, io_dtype=jnp.bfloat16)
    out_bf16 = jax.block_until_ready(out_bf16)
    assert jnp.allclose(out_bf16, ref, atol=1e-1, rtol=1e-1), float(
        jnp.max(jnp.abs(out_bf16 - ref)))

    print("KERNEL_OK")
</pallas_src>

<mosaic_0001>
module attributes {stable_mosaic.version = 11 : i64} {
  func.func @spt_kernel(%arg0: i32, %arg1: memref<32x256xf32, #tpu.memory_space<vmem>>, %arg2: memref<256x128xf32, #tpu.memory_space<vmem>>, %arg3: memref<1x128xf32, #tpu.memory_space<vmem>>, %arg4: memref<32x128xf32, #tpu.memory_space<vmem>>) attributes {dimension_semantics = [#tpu.dimension_semantics<parallel>], iteration_bounds = array<i64: 1>, scalar_prefetch = 0 : i64, scratch_operands = 0 : i64, tpu.core_type = #tpu.core_type<tc>, window_params = [{transform_indices = @transform_0, window_bounds = array<i64: 32, 256>}, {pipeline_mode = #tpu.pipeline_mode<synchronous>, transform_indices = @transform_1, window_bounds = array<i64: 256, 128>}, {pipeline_mode = #tpu.pipeline_mode<synchronous>, transform_indices = @transform_2, window_bounds = array<i64: 1, 128>}, {transform_indices = @transform_3, window_bounds = array<i64: 32, 128>}]} {
    %c0 = arith.constant 0 : index
    %c0_0 = arith.constant 0 : index
    %0 = vector.load %arg1[%c0, %c0_0] : memref<32x256xf32, #tpu.memory_space<vmem>>, vector<32x256xf32>
    %cst = arith.constant dense<0.000000e+00> : vector<32xf32>
    %1 = vector.multi_reduction <add>, %0, %cst [1] : vector<32x256xf32> to vector<32xf32>
    %2 = vector.shape_cast %1 : vector<32xf32> to vector<32x1xf32>
    %cst_1 = arith.constant 0.00416666688 : f32
    %3 = vector.broadcast %cst_1 : f32 to vector<32x1xf32>
    %4 = arith.mulf %2, %3 : vector<32x1xf32>
    %5 = arith.mulf %0, %0 : vector<32x256xf32>
    %cst_2 = arith.constant dense<0.000000e+00> : vector<32xf32>
    %6 = vector.multi_reduction <add>, %5, %cst_2 [1] : vector<32x256xf32> to vector<32xf32>
    %7 = vector.shape_cast %6 : vector<32xf32> to vector<32x1xf32>
    %cst_3 = arith.constant 0.00416666688 : f32
    %8 = vector.broadcast %cst_3 : f32 to vector<32x1xf32>
    %9 = arith.mulf %7, %8 : vector<32x1xf32>
    %10 = arith.mulf %4, %4 : vector<32x1xf32>
    %11 = arith.subf %9, %10 : vector<32x1xf32>
    %12 = vector.broadcast %4 : vector<32x1xf32> to vector<32x256xf32>
    %13 = arith.subf %0, %12 : vector<32x256xf32>
    %cst_4 = arith.constant 9.99999974E-6 : f32
    %14 = vector.broadcast %cst_4 : f32 to vector<32x1xf32>
    %15 = arith.addf %11, %14 : vector<32x1xf32>
    %16 = math.rsqrt %15 : vector<32x1xf32>
    %17 = vector.broadcast %16 : vector<32x1xf32> to vector<32x256xf32>
    %18 = arith.mulf %13, %17 : vector<32x256xf32>
    %c0_5 = arith.constant 0 : index
    %c0_6 = arith.constant 0 : index
    %19 = vector.load %arg2[%c0_5, %c0_6] : memref<256x128xf32, #tpu.memory_space<vmem>>, vector<256x128xf32>
    %cst_7 = arith.constant dense<0.000000e+00> : vector<32x128xf32>
    %20 = tpu.matmul %18, %19, %cst_7 {dimension_numbers = #tpu.dot_dimension_numbers<[1], [0], [0], [1], [0, 0, 1, 1], [], []>} : vector<32x256xf32>, vector<256x128xf32>, vector<32x128xf32> -> vector<32x128xf32>
    %c0_8 = arith.constant 0 : index
    %c0_9 = arith.constant 0 : index
    %21 = vector.load %arg3[%c0_8, %c0_9] : memref<1x128xf32, #tpu.memory_space<vmem>>, vector<1x128xf32>
    %22 = vector.broadcast %21 : vector<1x128xf32> to vector<32x128xf32>
    %23 = arith.addf %20, %22 : vector<32x128xf32>
    %c0_10 = arith.constant 0 : index
    %c0_11 = arith.constant 0 : index
    %24 = vector.load %arg4[%c0_10, %c0_11] : memref<32x128xf32, #tpu.memory_space<vmem>>, vector<32x128xf32>
    tpu.vector_store %arg4[%c0_10, %c0_11], %23 {strides = array<i32>} : memref<32x128xf32, #tpu.memory_space<vmem>>, vector<32x128xf32>,
    return
  }
  func.func @transform_0(%arg0: i32) -> (i32, i32) {
    %c0_i32 = arith.constant 0 : i32
    %c0_i32_0 = arith.constant 0 : i32
    return %arg0, %c0_i32 : i32, i32
  }
  func.func @transform_1(%arg0: i32) -> (i32, i32) {
    %c0_i32 = arith.constant 0 : i32
    %c0_i32_0 = arith.constant 0 : i32
    %c0_i32_1 = arith.constant 0 : i32
    return %c0_i32, %c0_i32_0 : i32, i32
  }
  func.func @transform_2(%arg0: i32) -> (i32, i32) {
    %c0_i32 = arith.constant 0 : i32
    %c0_i32_0 = arith.constant 0 : i32
    %c0_i32_1 = arith.constant 0 : i32
    return %c0_i32, %c0_i32_0 : i32, i32
  }
  func.func @transform_3(%arg0: i32) -> (i32, i32) {
    %c0_i32 = arith.constant 0 : i32
    %c0_i32_0 = arith.constant 0 : i32
    return %arg0, %c0_i32 : i32, i32
  }
}

</mosaic_0001>

<bundles_post_ra>
// kernel: tpu_custom_call.1
= control target key start
LH: loop header
LB: loop body
LE: loop exit
PB: predicated region body
PF: predicated region fallthrough
CT: control target
= control target key end

     0   :  { %8 = vsyncpa [#allocation3], 0  ;;  %s520_s0 = inlined_call_operand.hbm [shape: f32[32,256], index: 0, kind: input, shape index: {}]   ;;  %s521_s1 = inlined_call_operand.hbm [shape: f32[256,128], index: 1, kind: input, shape index: {}]   ;;  %s522_s2 = inlined_call_operand.vmem [shape: f32[1,128], index: 2, kind: input, shape index: {}]   ;;  %s523_s3 = inlined_call_operand.hbm [shape: f32[32,128], index: 3, kind: output, shape index: {}]  }
   0x1   :  { %9 = vsyncpa [#allocation6], 0 }
   0x2   :  { %10 = vsyncpa [#allocation4], 0  ;;  %s427_s12 = smov [#allocation2]  }
   0x3   :  { %s16_s13 = sshll.u32 %s427_s12, 4  ;;  %s17_s13 = int_to_ptr.vmem [resolvable:$true] %s16_s13 }
   0x4   :  { %s369_s14 = scalar_lea.vmem %s17_s13, 1024  ;;  %p374_p1 = scmp.lt.s32.totalorder %s17_s13, %s17_s13 }
   0x5   :  { %p370_p0 = scmp.ne.s32.totalorder %s17_s13, %s369_s14  ;;  %p375_p2 = scmp.lt.s32.totalorder %s369_s14, %s369_s14 }
   0x7   :  { %p376_p3 = por %p375_p2, %p374_p1 }
   0x9   :  { %p377_p4 = pnand %p376_p3, %p370_p0 }
   0xb   :  { %380 = shalt.err (!%p377_p4)
}
   0xc   :  { %s428_s15 = smov 256   ;;  %s429_s16 = smov 16  }
   0xd   :  { %22 = dma.hbm_to_vmem [thread:$0]  %s520_s0, 1024, %s17_s13, [#allocation3], %s428_s15, %s428_s15, %s429_s16  }
   0xe   :  { %s430_s19 = smov [#allocation5]  }
   0xf   :  { %s28_s20 = sshll.u32 %s430_s19, 4  ;;  %s29_s20 = int_to_ptr.vmem [resolvable:$true] %s28_s20 }
  0x10   :  { %s389_s21 = scalar_lea.vmem %s29_s20, 4096  ;;  %p394_p6 = scmp.lt.s32.totalorder %s29_s20, %s29_s20 }
  0x11   :  { %p390_p5 = scmp.ne.s32.totalorder %s29_s20, %s389_s21  ;;  %p395_p7 = scmp.lt.s32.totalorder %s389_s21, %s389_s21 }
  0x13   :  { %p396_p8 = por %p395_p7, %p394_p6 }
  0x15   :  { %p397_p9 = pnand %p396_p8, %p390_p5 }
  0x17   :  { %400 = shalt.err (!%p397_p9)
}
  0x18   :  { %s431_s22 = smov 128   ;;  %s432_s23 = smov 8  }
  0x19   :  { %34 = dma.hbm_to_vmem [thread:$0]  %s521_s1, 4096, %s29_s20, [#allocation6], %s431_s22, %s431_s22, %s432_s23  }
  0x1a   :  { %421 = dma.done.wait [#allocation3], 1024  }
  0x1b   :  { %422 = vsyncadd [#allocation3], 4294966272 }
  0x1c   :  { %423 = dma.done.wait [#allocation6], 4096  }
  0x1d   :  { %424 = vsyncadd [#allocation6], 4294963200  ;;  %v463_v0 = vld [vmem:[#allocation2 + $0x30] sm:$0xff]  ;;  %v465_v1 = vld [vmem:[#allocation2 + $0x38] sm:$0xff]  ;;  %s433_s26 = smov [#allocation7]  }
  0x1e   :  { %v467_v2 = vld [vmem:[#allocation2] sm:$0xff]  ;;  %v60_v3 = vadd.f32 %v465_v1, %v463_v0  ;;  %v471_v4 = vld [vmem:[#allocation2 + $0x8] sm:$0xff]  ;;  %v154_v10 = vld [vmem:[#allocation5 + $0xf8] sm:$0xff]  ;;  %v73_v22 = vmul.f32 %v463_v0, %v463_v0  ;;  %v74_v23 = vmul.f32 %v465_v1, %v465_v1  ;;  %s256_s27 = sshll.u32 %s433_s26, 4  ;;  %s257_s27 = int_to_ptr.vmem [resolvable:$true] %s256_s27 }
  0x1f   :  { %v67_v5 = vmul.f32 %v467_v2, %v467_v2  ;;  %v475_v6 = vld [vmem:[#allocation2 + $0x20] sm:$0xff]  ;;  %v477_v7 = vld [vmem:[#allocation2 + $0x28] sm:$0xff]  ;;  %v51_v8 = vadd.f32 %v471_v4, %v467_v2  ;;  %v68_v9 = vmul.f32 %v471_v4, %v471_v4  ;;  %v138_v13 = vld [vmem:[#allocation5 + $0x78] sm:$0xff]  ;;  %270 = vmatprep.subr.mxu0 %v154_v10  ;;  %314 = vmatprep.subr.mxu1 %v154_v10  ;;  %p406_p11 = scmp.lt.s32.totalorder %s257_s27, %s257_s27 }
  0x20   :  { %61 = vadd.xlane.f32.xlu1 %v60_v3  ;;  %v71_v11 = vmul.f32 %v475_v6, %v475_v6  ;;  %v72_v12 = vmul.f32 %v477_v7, %v477_v7  ;;  %v153_v14 = vld [vmem:[#allocation5 + $0xf0] sm:$0xff]  ;;  %v57_v16 = vadd.f32 %v477_v7, %v475_v6  ;;  %v491_v19 = vld [vmem:[#allocation2 + $0x18] sm:$0xff]  ;;  %271 = vmatpush3.msra.mxu0 %v138_v13  ;;  %v152_v20 = vld [vmem:[#allocation5 + $0xe8] sm:$0xff] }
  0x21   :  { %52 = vadd.xlane.f32.xlu0 %v51_v8  ;;  %v75_v15 = vadd.f32 %v68_v9, %v67_v5  ;;  %v137_v17 = vld [vmem:[#allocation5 + $0x70] sm:$0xff]  ;;  %272 = vmatprep.subr.mxu0 %v153_v14  ;;  %v70_v26 = vmul.f32 %v491_v19, %v491_v19  ;;  %v84_v27 = vadd.f32 %v74_v23, %v73_v22  ;;  %v136_v29 = vld [vmem:[#allocation5 + $0x68] sm:$0xff]  ;;  %v151_v30 = vld [vmem:[#allocation5 + $0xe0] sm:$0xff] }
  0x22   :  { %v489_v18 = vld [vmem:[#allocation2 + $0x10] sm:$0xff]  ;;  %330 = vmatpush3.msra.mxu1 %v138_v13  ;;  %v81_v21 = vadd.f32 %v72_v12, %v71_v11  ;;  %273 = vmatpush3.msra.mxu0 %v137_v17  ;;  %v135_v31 = vld [vmem:[#allocation5 + $0x60] sm:$0xff]  ;;  %v150_v32 = vld [vmem:[#allocation5 + $0xd8] sm:$0xff] }
  0x23   :  { %v54_v24 = vadd.f32 %v491_v19, %v489_v18  ;;  %v69_v25 = vmul.f32 %v489_v18, %v489_v18  ;;  %274 = vmatprep.subr.mxu0 %v152_v20  ;;  %315 = vmatprep.subr.mxu1 %v153_v14  ;;  %v134_v33 = vld [vmem:[#allocation5 + $0x58] sm:$0xff]  ;;  %v149_v34 = vld [vmem:[#allocation5 + $0xd0] sm:$0xff]  ;;  %v148_v36 = vld [vmem:[#allocation5 + $0xc8] sm:$0xff] }
  0x24   :  { %76 = vadd.xlane.f32.xlu1 %v75_v15  ;;  %331 = vmatpush3.msra.mxu1 %v137_v17  ;;  %v133_v35 = vld [vmem:[#allocation5 + $0x50] sm:$0xff]  ;;  %v132_v37 = vld [vmem:[#allocation5 + $0x48] sm:$0xff]  ;;  %v147_v38 = vld [vmem:[#allocation5 + $0xc0] sm:$0xff] }
  0x25   :  { %58 = vadd.xlane.f32.xlu0 %v57_v16  ;;  %316 = vmatprep.subr.mxu1 %v152_v20  ;;  %v78_v28 = vadd.f32 %v70_v26, %v69_v25  ;;  %v131_v39 = vld [vmem:[#allocation5 + $0x40] sm:$0xff]  ;;  %v146_v40 = vld [vmem:[#allocation5 + $0xb8] sm:$0xff]  ;;  %v145_v42 = vld [vmem:[#allocation5 + $0xb0] sm:$0xff] }
  0x26   :  { %275 = vmatpush3.msra.mxu0 %v136_v29  ;;  %332 = vmatpush3.msra.mxu1 %v136_v29  ;;  %v130_v41 = vld [vmem:[#allocation5 + $0x38] sm:$0xff]  ;;  %v129_v43 = vld [vmem:[#allocation5 + $0x30] sm:$0xff]  ;;  %v144_v44 = vld [vmem:[#allocation5 + $0xa8] sm:$0xff] }
  0x27   :  { %276 = vmatprep.subr.mxu0 %v151_v30  ;;  %317 = vmatprep.subr.mxu1 %v151_v30  ;;  %v128_v45 = vld [vmem:[#allocation5 + $0x28] sm:$0xff]  ;;  %v143_v46 = vld [vmem:[#allocation5 + $0xa0] sm:$0xff]  ;;  %v142_v48 = vld [vmem:[#allocation5 + $0x98] sm:$0xff] }
  0x28   :  { %82 = vadd.xlane.f32.xlu1 %v81_v21  ;;  %277 = vmatpush3.msra.mxu0 %v135_v31  ;;  %v127_v47 = vld [vmem:[#allocation5 + $0x20] sm:$0xff]  ;;  %v126_v49 = vld [vmem:[#allocation5 + $0x18] sm:$0xff]  ;;  %v141_v50 = vld [vmem:[#allocation5 + $0x90] sm:$0xff] }
  0x29   :  { %55 = vadd.xlane.f32.xlu0 %v54_v24  ;;  %278 = vmatprep.subr.mxu0 %v150_v32  ;;  %v125_v51 = vld [vmem:[#allocation5 + $0x10] sm:$0xff]  ;;  %v140_v52 = vld [vmem:[#allocation5 + $0x88] sm:$0xff]  ;;  %v139_v54 = vld [vmem:[#allocation5 + $0x80] sm:$0xff] }
  0x2a   :  { %279 = vmatpush3.msra.mxu0 %v134_v33  ;;  %333 = vmatpush3.msra.mxu1 %v135_v31  ;;  %v124_v53 = vld [vmem:[#allocation5 + $0x8] sm:$0xff]  ;;  %v123_v55 = vld [vmem:[#allocation5] sm:$0xff] }
  0x2b   :  { %280 = vmatprep.subr.mxu0 %v149_v34  ;;  %318 = vmatprep.subr.mxu1 %v150_v32 }
  0x2c   :  { %85 = vadd.xlane.f32.xlu1 %v84_v27  ;;  %281 = vmatpush3.msra.mxu0 %v133_v35 }
  0x2d   :  { %79 = vadd.xlane.f32.xlu0 %v78_v28  ;;  %334 = vmatpush3.msra.mxu1 %v134_v33 }
  0x2e   :  { %282 = vmatprep.subr.mxu0 %v148_v36  ;;  %319 = vmatprep.subr.mxu1 %v149_v34 }
  0x2f   :  { %283 = vmatpush3.msra.mxu0 %v132_v37  ;;  %335 = vmatpush3.msra.mxu1 %v133_v35 }
  0x30   :  { %284 = vmatprep.subr.mxu0 %v147_v38  ;;  %320 = vmatprep.subr.mxu1 %v148_v36 }
  0x31   :  { %285 = vmatpush3.msra.mxu0 %v131_v39  ;;  %336 = vmatpush3.msra.mxu1 %v132_v37 }
  0x32   :  { %286 = vmatprep.subr.mxu0 %v146_v40  ;;  %321 = vmatprep.subr.mxu1 %v147_v38 }
  0x33   :  { %287 = vmatpush3.msra.mxu0 %v130_v41  ;;  %337 = vmatpush3.msra.mxu1 %v131_v39 }
  0x34   :  { %288 = vmatprep.subr.mxu0 %v145_v42  ;;  %322 = vmatprep.subr.mxu1 %v146_v40 }
  0x35   :  { %289 = vmatpush3.msra.mxu0 %v129_v43  ;;  %338 = vmatpush3.msra.mxu1 %v130_v41 }
  0x36   :  { %290 = vmatprep.subr.mxu0 %v144_v44  ;;  %323 = vmatprep.subr.mxu1 %v145_v42 }
  0x37   :  { %291 = vmatpush3.msra.mxu0 %v128_v45  ;;  %339 = vmatpush3.msra.mxu1 %v129_v43 }
  0x38   :  { %292 = vmatprep.subr.mxu0 %v143_v46  ;;  %324 = vmatprep.subr.mxu1 %v144_v44 }
  0x39   :  { %293 = vmatpush3.msra.mxu0 %v127_v47  ;;  %340 = vmatpush3.msra.mxu1 %v128_v45 }
  0x3a   :  { %294 = vmatprep.subr.mxu0 %v142_v48  ;;  %325 = vmatprep.subr.mxu1 %v143_v46 }
  0x3b   :  { %295 = vmatpush3.msra.mxu0 %v126_v49  ;;  %341 = vmatpush3.msra.mxu1 %v127_v47 }
  0x3c   :  { %296 = vmatprep.subr.mxu0 %v141_v50  ;;  %326 = vmatprep.subr.mxu1 %v142_v48 }
  0x3d   :  { %297 = vmatpush3.msra.mxu0 %v125_v51  ;;  %342 = vmatpush3.msra.mxu1 %v126_v49 }
  0x3e   :  { %298 = vmatprep.subr.mxu0 %v140_v52  ;;  %327 = vmatprep.subr.mxu1 %v141_v50 }
  0x3f   :  { %299 = vmatpush3.msra.mxu0 %v124_v53  ;;  %343 = vmatpush3.msra.mxu1 %v125_v51 }
  0x40   :  { %300 = vmatprep.subr.mxu0 %v139_v54  ;;  %328 = vmatprep.subr.mxu1 %v140_v52 }
  0x41   :  { %301 = vmatpush3.msra.mxu0 %v123_v55  ;;  %344 = vmatpush3.msra.mxu1 %v124_v53 }
  0x42   :  { %329 = vmatprep.subr.mxu1 %v139_v54 }
  0x43   :  { %345 = vmatpush3.msra.mxu1 %v123_v55 }
  0xa9   :  { %v62_v56 = vpop.xlane.xlu1 %61 }
  0xaa   :  { %v53_v57 = vpop.xlane.xlu0 %52  ;;  %v66_v8 = vmul.f32 0.004166667, %v62_v56 }
  0xab   :  { %v63_v58 = vmul.f32 0.004166667, %v53_v57 }
  0xac   :  { %v94_v17 = vmul.f32 %v66_v8, %v66_v8  ;;  %v105_v38 = vsub.f32 %v463_v0, %v66_v8  ;;  %v106_v39 = vsub.f32 %v465_v1, %v66_v8  ;;  %v269_v0 = vld [vmem:[%s522_s2] ss:$0 sm:$0xff]  ;;  %s401_s2 = scalar_lea.vmem %s257_s27, 512 }
  0xad   :  { %v77_v59 = vpop.xlane.xlu1 %76  ;;  %v91_v61 = vmul.f32 %v63_v58, %v63_v58  ;;  %v99_v28 = vsub.f32 %v467_v2, %v63_v58  ;;  %v100_v29 = vsub.f32 %v471_v4, %v63_v58  ;;  %p402_p10 = scmp.ne.s32.totalorder %s257_s27, %s401_s2  ;;  %p407_p12 = scmp.lt.s32.totalorder %s401_s2, %s401_s2 }
  0xae   :  { %v87_v60 = vmul.f32 0.004166667, %v77_v59  ;;  %v59_v62 = vpop.xlane.xlu0 %58 }
  0xaf   :  { %v65_v63 = vmul.f32 0.004166667, %v59_v62  ;;  %p408_p13 = por %p407_p12, %p406_p11 }
  0xb0   :  { %v95_v3 = vsub.f32 %v87_v60, %v91_v61 }
  0xb1   :  { %v83_v5 = vpop.xlane.xlu1 %82  ;;  %v93_v11 = vmul.f32 %v65_v63, %v65_v63  ;;  %v103_v33 = vsub.f32 %v475_v6, %v65_v63  ;;  %v104_v34 = vsub.f32 %v477_v7, %v65_v63  ;;  %p409_p0 = pnand %p408_p13, %p402_p10 }
  0xb2   :  { %v107_v9 = vadd.f32 1e-05, %v95_v3  ;;  %v89_v10 = vmul.f32 0.004166667, %v83_v5  ;;  %v56_v12 = vpop.xlane.xlu0 %55 }
  0xb3   :  { %v64_v13 = vmul.f32 0.004166667, %v56_v12 }
  0xb4   :  { %353 = vrsqrt.f32 %v107_v9  ;;  %v97_v14 = vsub.f32 %v89_v10, %v93_v11 }
  0xb5   :  { %v86_v15 = vpop.xlane.xlu1 %85  ;;  %v92_v22 = vmul.f32 %v64_v13, %v64_v13  ;;  %v101_v4 = vsub.f32 %v489_v18, %v64_v13  ;;  %v102_v40 = vsub.f32 %v491_v19, %v64_v13 }
  0xb6   :  { %v109_v16 = vadd.f32 1e-05, %v97_v14  ;;  %v90_v20 = vmul.f32 0.004166667, %v86_v15  ;;  %v80_v21 = vpop.xlane.xlu0 %79 }
  0xb7   :  { %v88_v23 = vmul.f32 0.004166667, %v80_v21 }
  0xb8   :  { %355 = vrsqrt.f32 %v109_v16  ;;  %v98_v24 = vsub.f32 %v90_v20, %v94_v17 }
  0xb9   :  { %v96_v25 = vsub.f32 %v88_v23, %v92_v22 }
  0xba   :  { %v110_v26 = vadd.f32 1e-05, %v98_v24 }
  0xbb   :  { %v108_v27 = vadd.f32 1e-05, %v96_v25 }
  0xbc   :  { %357 = vrsqrt.f32 %v110_v26 }
  0xbd   :  { %359 = vrsqrt.f32 %v108_v27 }
  0xc1   :  { %v354_v30 = vpop.eup %353 }
  0xc2   :  { %v116_v31 = vmul.f32 %v354_v30, %v100_v29  ;;  %v115_v32 = vmul.f32 %v354_v30, %v99_v28 }
  0xc4   :  { %226 = vmatprep.mubr.f32.mxu0 %v116_v31 }
  0xc5   :  { %v356_v35 = vpop.eup %355  ;;  %227 = vmatmul.mubr.f32.vlgmr.msra.gmra.mxu0 %v115_v32 }
  0xc6   :  { %v120_v36 = vmul.f32 %v356_v35, %v104_v34  ;;  %v119_v37 = vmul.f32 %v356_v35, %v103_v33 }
  0xc8   :  { %236 = vmatprep.mubr.f32.mxu1 %v120_v36 }
  0xc9   :  { %v358_v2 = vpop.eup %357  ;;  %237 = vmatmul.mubr.f32.vlgmr.msra.gmra.mxu1 %v119_v37 }
  0xca   :  { %v360_v41 = vpop.eup %359  ;;  %v122_v6 = vmul.f32 %v358_v2, %v106_v39  ;;  %v121_v42 = vmul.f32 %v358_v2, %v105_v38 }
  0xcb   :  { %v118_v43 = vmul.f32 %v360_v41, %v102_v40  ;;  %v117_v7 = vmul.f32 %v360_v41, %v101_v4 }
  0xcc   :  { %241 = vmatprep.mubr.f32.mxu1 %v122_v6 }
  0xcd   :  { %231 = vmatprep.mubr.f32.mxu0 %v118_v43  ;;  %242 = vmatmul.mubr.f32.gmra.mxu1 %v121_v42 }
  0xce   :  { %232 = vmatmul.mubr.f32.gmra.mxu0 %v117_v7 }
 0x185   :  { %v302_v44 = vpop.f32.mrf.mxu0 }
 0x187   :  { %v303_v1 = vpop.f32.mrf.mxu0 }
 0x188   :  { %v304_v45 = vadd.f32 %v303_v1, %v302_v44 }
 0x189   :  { %v308_v18 = vpop.f32.mrf.mxu1 }
 0x18a   :  { %v229_v46 = vadd.f32 %v304_v45, %v269_v0 }
 0x18b   :  { %v309_v19 = vpop.f32.mrf.mxu1 }
 0x18c   :  { %247 = vst [vmem:[#allocation7] sm:$0xff] %v229_v46  ;;  %v310_v47 = vadd.f32 %v309_v19, %v308_v18 }
 0x18d   :  { %v311_v48 = vpop.f32.mrf.mxu1 }
 0x18e   :  { %v239_v49 = vadd.f32 %v310_v47, %v269_v0  ;;  %v305_v50 = vpop.f32.mrf.mxu0 }
 0x18f   :  { %v312_v51 = vpop.f32.mrf.mxu1 }
 0x190   :  { %249 = vst [vmem:[#allocation7 + $0x10] sm:$0xff] %v239_v49  ;;  %v306_v52 = vpop.f32.mrf.mxu0  ;;  %v313_v53 = vadd.f32 %v312_v51, %v311_v48 }
 0x191   :  { %v307_v54 = vadd.f32 %v306_v52, %v305_v50 }
 0x192   :  { %v244_v55 = vadd.f32 %v313_v53, %v269_v0 }
 0x193   :  { %v234_v56 = vadd.f32 %v307_v54, %v269_v0 }
 0x194   :  { %250 = vst [vmem:[#allocation7 + $0x18] sm:$0xff] %v244_v55 }
 0x195   :  { %248 = vst [vmem:[#allocation7 + $0x8] sm:$0xff] %v234_v56 }
 0x196   :  { %412 = shalt.err (!%p409_p0)
}
 0x197   :  { %262 = dma.vmem_to_hbm [thread:$0]  %s257_s27, 512, %s523_s3, [#allocation4], %s431_s22, %s431_s22, %s432_s23  }
 0x198   :  { %425 = dma.done.wait [#allocation4], 512  }
 0x199   :  { %426 = vsyncadd [#allocation4], 4294966784 }
 0x19a   :  { %266 = vsyncpa [#allocation3], 1 }
 0x19b   :  { %267 = vsyncpa [#allocation6], 1 }
 0x19c   :  { %268 = vsyncpa [#allocation4], 1 }

</bundles_post_ra>
